<compile_context>
chip_gen: v5e
topology: v5e:2x2
jax: 0.10.0
libtpu: 0.0.40
codegen_flags: <defaults>
</compile_context>

<pallas_src>
import functools
import itertools

import jax
import jax.numpy as jnp
import numpy as np
from jax.experimental import pallas as pl
from jax.experimental.pallas import tpu as pltpu


def _round_up(a, b):
    return (a + b - 1) // b * b


# ---------------------------------------------------------------------------
# Pallas kernel: Conv1d classifier (G shifted matmuls) + bias + log_softmax
# ---------------------------------------------------------------------------
def _conv_logsoftmax_kernel(z_ref, w_ref, b_ref, o_ref, *,
                            n_groups, group_width, t_tile, halo, compute_dtype):
    # z_ref: (1, Tz, SH)  f32   one whole batch element (resident across the t axis)
    # w_ref: (G*SH, Cp)   bf16  conv weight, one (SH, Cp) block per group (single-buffered)
    # b_ref: (1, Cp)      f32   bias (padded classes = -1e9)
    # o_ref: (1, TT, Cp)  f32   log-softmax for output frames [t0, t0+TT)
    t0 = pl.multiple_of(pl.program_id(1) * t_tile, t_tile)

    # One aligned dynamic load of the tile rows plus an 8-row halo; the shifted
    # per-group views are cheap static slices of the loaded window (no extra
    # HBM traffic, no unaligned dynamic loads).
    zwin = z_ref[0, pl.ds(t0, t_tile + halo), :]                 # (TT+halo, SH) f32

    # g = 0 initializes the accumulator directly (saves a zeros+add VPU pass);
    # bf16 cast happens here, in-kernel, right before the MXU dot.
    acc = jnp.dot(zwin[0:t_tile].astype(compute_dtype),
                  w_ref[pl.ds(0, group_width), :],
                  preferred_element_type=jnp.float32)
    for g in range(1, n_groups):                                 # static unroll (G == 2 default)
        acc = acc + jnp.dot(zwin[g:g + t_tile].astype(compute_dtype),
                            w_ref[pl.ds(g * group_width, group_width), :],
                            preferred_element_type=jnp.float32)

    bias = b_ref[...]                                            # (1, Cp) f32

    # Stream the log-softmax epilogue in fixed row chunks (<=64, multiple of 8)
    # so the (rows, Cp) f32 temporaries stay close to the vreg file.
    chunk = t_tile
    for cand in (64, 48, 32, 16, 8):
        if t_tile % cand == 0:
            chunk = min(t_tile, cand)
            break
    for r0 in range(0, t_tile, chunk):
        logits = acc[r0:r0 + chunk] + bias                       # (chunk, Cp) f32
        m = jnp.max(logits, axis=-1, keepdims=True)
        lse = jnp.log(jnp.sum(jnp.exp(logits - m), axis=-1, keepdims=True)) + m
        o_ref[0, pl.ds(r0, chunk), :] = (logits - lse).astype(o_ref.dtype)


def classifier_log_probs(c_feature, w, b, *, size_kernel,
                         compute_dtype=jnp.bfloat16, max_time_tile=256):
    """Fused Conv1d(H -> C, K=size_kernel, stride=K//2) + bias + log_softmax.

    c_feature: (B, S, H) f32, w: (C, H, K), b: (C,).
    Returns a padded (B, Tp, Cp) f32 log-prob tensor (Tp >= T, Cp >= C); rows
    >= T and columns >= C are never read by the downstream CTC loss.
    """
    B, S, H = c_feature.shape
    C, H2, K = w.shape
    assert H2 == H and K == size_kernel
    stride = size_kernel // 2
    assert stride >= 1 and S >= K
    T = (S - K) // stride + 1                # true number of output frames
    G = -(-K // stride)                      # ceil(K / stride) shifted matmuls
    Kp = G * stride
    SH = stride * H                          # width of one stride-group row
    Cp = _round_up(C, 128)                   # lane-dense output classes

    # Time tile (multiple of 16 rows for bf16 sublane packing), padded T.
    TT = min(_round_up(max_time_tile, 16), _round_up(T, 16))
    Tp = _round_up(T, TT)
    nT = Tp // TT
    halo = _round_up(G - 1, 8)               # extra z rows read per tile window

    # Stride-grouped view of the input: z[b, u, r*H + h] = c[b, u*stride + r, h].
    # z stays f32 -- the bf16 cast happens inside the kernel, so there is no
    # separate HBM cast pass.  A pad/slice copy is only emitted when the free
    # reshape is not possible (and may be fused via allow_input_fusion).
    Tz_min = Tp + halo
    if S % stride == 0 and S // stride >= Tz_min:
        Tz = S // stride
        z = c_feature.reshape(B, Tz, SH)                         # free reshape, no copy
    else:
        Tz = Tz_min
        S_need = Tz * stride
        if S_need >= S:
            c_feature = jnp.pad(c_feature, ((0, 0), (0, S_need - S), (0, 0)))
        else:
            c_feature = c_feature[:, :S_need]
        z = c_feature.reshape(B, Tz, SH)

    # Conv weight -> (G*SH, Cp) matmul matrix, group-major rows:
    #   w_mat[g*SH + r*H + h, c] = w[c, h, g*stride + r]   (0 for k >= K)
    w_pad = jnp.pad(w, ((0, 0), (0, 0), (0, Kp - K)))                    # (C, H, Kp)
    w_mat = jnp.transpose(w_pad.reshape(C, H, G, stride), (2, 3, 1, 0)).reshape(G * SH, C)
    w_mat = jnp.pad(w_mat, ((0, 0), (0, Cp - C))).astype(compute_dtype)

    # Padded classes get bias -1e9 so exp(logit - max) underflows to exactly 0.
    bias = jnp.full((1, Cp), -1e9, jnp.float32).at[0, :C].set(b.astype(jnp.float32))

    kernel = functools.partial(_conv_logsoftmax_kernel, n_groups=G, group_width=SH,
                               t_tile=TT, halo=halo, compute_dtype=compute_dtype)

    # Explicit VMEM budget for the chosen tiles (defaults: 16/32 MiB scoped,
    # well below physical; v7x physical VMEM is 64 MiB).
    # TODO(synk): for extremely long sequences the resident per-batch z block
    # should switch to overlapping pl.Element time blocks to bound VMEM.
    vmem_bytes = (2 * Tz * SH * 4                # z (f32), double-buffered across batch
                  + G * SH * Cp * 2              # weights (bf16), single-buffered
                  + 2 * Cp * 4                   # bias
                  + 2 * TT * Cp * 4              # output tile (f32), double-buffered
                  + 4 * (TT + halo) * SH * 4     # in-kernel window + bf16 temporaries
                  + 8 * TT * Cp * 4)             # accumulator + epilogue temporaries
    vmem_limit = int(min(100 * 2 ** 20, max(16 * 2 ** 20, 2 * vmem_bytes)))

    cost = pl.CostEstimate(
        flops=2 * B * Tp * (G * SH) * Cp,
        transcendentals=B * Tp * Cp,
        bytes_accessed=int(B * Tz * SH * 4 + G * SH * Cp * 2 + Cp * 4 + B * Tp * Cp * 4),
    )

    out = pl.pallas_call(
        kernel,
        out_shape=jax.ShapeDtypeStruct((B, Tp, Cp), jnp.float32),
        grid_spec=pltpu.PrefetchScalarGridSpec(
            num_scalar_prefetch=0,
            grid=(B, nT),
            in_specs=[
                # Whole-sequence z block per batch element; block index is constant
                # along the time-tile axis, so it is DMA'd from HBM once per batch.
                pl.BlockSpec((1, Tz, SH), lambda i, t: (i, 0, 0)),
                # Grid-invariant weight / bias: single-buffered (no duplicated VMEM,
                # no re-DMA scheduling of invariant blocks).
                pl.BlockSpec((G * SH, Cp), lambda i, t: (0, 0),
                             pipeline_mode=pl.Buffered(1)),
                pl.BlockSpec((1, Cp), lambda i, t: (0, 0),
                             pipeline_mode=pl.Buffered(1)),
            ],
            out_specs=pl.BlockSpec((1, TT, Cp), lambda i, t: (i, t, 0)),
        ),
        compiler_params=pltpu.CompilerParams(
            dimension_semantics=("parallel", "parallel"),
            vmem_limit_bytes=vmem_limit,
            allow_input_fusion=[True, False, False],
        ),
        cost_estimate=cost,
    )(z, w_mat, bias)
    # NOTE: returned padded -- no out[:, :T, :C] slice (saves a full HBM
    # read+write of the logits right after an HBM-bound kernel).  The caller
    # must clamp CTC input lengths with the true static T.
    return out


# ---------------------------------------------------------------------------
# CTC loss (plain JAX): log-space alpha recursion, mean reduction, zero_infinity
# ---------------------------------------------------------------------------
_NEG = -1e30   # acts as -inf but stays NaN-free in f32 arithmetic


def _logsumexp3(a, b, c):
    m = jnp.maximum(jnp.maximum(a, b), c)
    return m + jnp.log(jnp.exp(a - m) + jnp.exp(b - m) + jnp.exp(c - m))


def _ctc_neg_log_likelihood(log_probs, labels, input_len, label_len, blank):
    """CTC forward (alpha) recursion in log space for one sample.

    log_probs: (T, C) f32 log-softmax (may be padded in T/C); labels: (Lmax,) int32.
    """
    # TODO(synk): the CTC DP is sequential with per-sample dynamic lengths; it has no
    # clean Pallas TPU mapping and is kept in plain JAX (lax.scan).
    T, _ = log_probs.shape
    Lmax = labels.shape[0]
    S = 2 * Lmax + 1
    labels = labels.astype(jnp.int32)

    ext = jnp.full((S,), blank, jnp.int32).at[1::2].set(labels)       # blank-interleaved
    lp_ext = jnp.take(log_probs, ext, axis=1)                         # (T, S) -- never reads padded classes
    pos = jnp.arange(S)
    prev2 = jnp.concatenate([jnp.full((2,), -1, jnp.int32), ext[:-2]])
    skip_ok = (pos >= 2) & (ext != blank) & (ext != prev2)
    valid = pos < (2 * label_len + 1)

    alpha = jnp.where(pos == 0, lp_ext[0, 0], _NEG)
    alpha = jnp.where(pos == 1, lp_ext[0, 1], alpha)
    alpha = jnp.where(valid, alpha, _NEG)

    def step(alpha, xs):
        t, lp_t = xs
        a1 = jnp.concatenate([jnp.full((1,), _NEG), alpha[:-1]])
        a2 = jnp.where(skip_ok,
                       jnp.concatenate([jnp.full((2,), _NEG), alpha[:-2]]), _NEG)
        new = lp_t + _logsumexp3(alpha, a1, a2)
        new = jnp.where(valid, new, _NEG)
        return jnp.where(t < input_len, new, alpha), None

    alpha, _ = jax.lax.scan(step, alpha, (jnp.arange(1, T), lp_ext[1:]))

    final_mask = (pos == 2 * label_len) | ((pos == 2 * label_len - 1) & (label_len > 0))
    fa = jnp.where(final_mask, alpha, _NEG)
    m = jnp.max(fa)
    return -(m + jnp.log(jnp.sum(jnp.exp(fa - m))))


def _ctc_loss_from_log_probs(log_probs, feature_size, label, label_size, blank,
                             *, t_valid=None):
    """cutData + clamp + CTCLoss(blank, reduction='mean', zero_infinity=True) + view(1,-1).

    `t_valid` is the true (unpadded) number of conv output frames; input lengths are
    clamped with it so padded time rows in `log_probs` are never read by the DP.
    cutData only drops frames/labels the CTC loss never reads (lengths already bound
    them), and torch's clamp(featureSize, max=cut_len) == min(featureSize, T) here.
    """
    T_true = log_probs.shape[1] if t_valid is None else int(t_valid)
    input_len = jnp.minimum(feature_size, T_true)
    nll = jax.vmap(_ctc_neg_log_likelihood, in_axes=(0, 0, 0, 0, None))(
        log_probs, label, input_len, label_size, blank)
    bad = jnp.isnan(nll) | jnp.isinf(nll) | (nll > -0.5 * _NEG)        # zero_infinity=True
    per_sample = jnp.where(bad, 0.0, nll) / jnp.maximum(label_size, 1).astype(jnp.float32)
    loss = jnp.mean(per_sample).reshape(1, 1)                          # reduction='mean', view(1,-1)
    return jnp.where(jnp.isnan(loss) | jnp.isinf(loss), 0.0, loss)     # final inf/nan guard


# ---------------------------------------------------------------------------
# Full forward + pure-JAX reference
# ---------------------------------------------------------------------------
def ctc_phone_criterion_forward(c_feature, feature_size, label, label_size, w, b,
                                *, n_phones, size_kernel=8):
    """CTCPhoneCriterion.forward with the default constructor flags."""
    # TODO(synk): the LSTM branch (useLSTM=True), Dropout2d and seqNorm are disabled in
    # the default config and are not implemented here.
    # TODO(synk): for configs with nPhones >= ~200 (Cp >= 256) the kernel should
    # scalar-prefetch labels and emit lp_ext directly instead of the full class slab.
    log_probs = classifier_log_probs(c_feature, w, b, size_kernel=size_kernel)
    stride = size_kernel // 2
    t_true = (c_feature.shape[1] - size_kernel) // stride + 1
    return _ctc_loss_from_log_probs(log_probs, feature_size // 4, label, label_size,
                                    blank=n_phones, t_valid=t_true)


def reference_log_probs(c_feature, w, b, *, size_kernel):
    stride = size_kernel // 2
    x = jnp.transpose(c_feature, (0, 2, 1))                            # (B, H, S)
    y = jax.lax.conv_general_dilated(x, w, (stride,), [(0, 0)],
                                     dimension_numbers=("NCH", "OIH", "NCH"))
    y = y + b[None, :, None]
    return jax.nn.log_softmax(jnp.transpose(y, (0, 2, 1)), axis=-1)    # (B, T, C)


def reference_forward(c_feature, feature_size, label, label_size, w, b,
                      *, n_phones, size_kernel=8):
    log_probs = reference_log_probs(c_feature, w, b, size_kernel=size_kernel)
    return _ctc_loss_from_log_probs(log_probs, feature_size // 4, label, label_size,
                                    blank=n_phones)


def _brute_force_ctc_check():
    """Validate the CTC DP against explicit path enumeration on a tiny case."""
    Tb, Cb = 4, 3
    blank = Cb - 1
    target = [0, 1]
    lp = jax.nn.log_softmax(jax.random.normal(jax.random.PRNGKey(1), (Tb, Cb)), axis=-1)
    nll = _ctc_neg_log_likelihood(lp, jnp.array(target, jnp.int32),
                                  jnp.int32(Tb), jnp.int32(len(target)), blank)
    lp_np = np.asarray(lp)
    total = 0.0
    for path in itertools.product(range(Cb), repeat=Tb):
        collapsed, prev = [], None
        for s in path:
            if s != prev:
                collapsed.append(s)
            prev = s
        if [s for s in collapsed if s != blank] == target:
            total += float(np.exp(sum(lp_np[t, s] for t, s in enumerate(path))))
    assert abs(float(nll) + np.log(total)) < 1e-4, (float(nll), -np.log(total))


if __name__ == "__main__":
    _brute_force_ctc_check()

    key = jax.random.PRNGKey(0)
    k_feat, k_w, k_b, k_lab = jax.random.split(key, 4)

    B, S, DIM_ENCODER = 2, 32, 64
    N_PHONES = 50                 # classifier outputs nPhones + 1 = 51 classes
    SIZE_KERNEL = 8               # stride = 4 -> T = (S - 8)//4 + 1 = 7
    L_MAX = 4
    C = N_PHONES + 1

    c_feature = jax.random.normal(k_feat, (B, S, DIM_ENCODER), jnp.float32)
    bound = 1.0 / (DIM_ENCODER * SIZE_KERNEL) ** 0.5
    w = jax.random.uniform(k_w, (C, DIM_ENCODER, SIZE_KERNEL), jnp.float32, -bound, bound)
    b = jax.random.uniform(k_b, (C,), jnp.float32, -bound, bound)
    feature_size = jnp.array([32, 28], jnp.int32)
    label_size = jnp.array([3, 2], jnp.int32)
    label = jax.random.randint(k_lab, (B, L_MAX), 0, N_PHONES, jnp.int32)

    fwd = jax.jit(functools.partial(ctc_phone_criterion_forward,
                                    n_phones=N_PHONES, size_kernel=SIZE_KERNEL))
    loss = jax.block_until_ready(fwd(c_feature, feature_size, label, label_size, w, b))
    assert loss.shape == (1, 1), loss.shape
    assert bool(jnp.isfinite(loss).all())

    # Pallas classifier vs. lax.conv reference (bf16 matmul, f32 accumulation).
    lp_pad = jax.block_until_ready(
        jax.jit(functools.partial(classifier_log_probs, size_kernel=SIZE_KERNEL))(
            c_feature, w, b))
    T_out = (S - SIZE_KERNEL) // (SIZE_KERNEL // 2) + 1
    assert lp_pad.shape[0] == B and lp_pad.shape[1] >= T_out and lp_pad.shape[2] >= C
    lp_pallas = lp_pad[:, :T_out, :C]                  # test-only slice of the padded output
    lp_ref = reference_log_probs(c_feature, w, b, size_kernel=SIZE_KERNEL)
    err = float(jnp.max(jnp.abs(lp_pallas - lp_ref)))
    assert err < 3e-2, err

    # End-to-end loss vs. pure-JAX reference.
    loss_ref = reference_forward(c_feature, feature_size, label, label_size, w, b,
                                 n_phones=N_PHONES, size_kernel=SIZE_KERNEL)
    assert jnp.allclose(loss, loss_ref, atol=5e-2, rtol=5e-2), \
        (float(loss[0, 0]), float(loss_ref[0, 0]))

    print("KERNEL_OK")
</pallas_src>

<mosaic_0001>
module attributes {stable_mosaic.version = 11 : i64} {
  func.func @_conv_logsoftmax_kernel(%arg0: i32, %arg1: i32, %arg2: memref<1x24x256xf32, #tpu.memory_space<vmem>>, %arg3: memref<512x128xbf16, #tpu.memory_space<vmem>>, %arg4: memref<1x128xf32, #tpu.memory_space<vmem>>, %arg5: memref<1x16x128xf32, #tpu.memory_space<vmem>>) attributes {dimension_semantics = [#tpu.dimension_semantics<parallel>, #tpu.dimension_semantics<parallel>], iteration_bounds = array<i64: 2, 1>, scalar_prefetch = 0 : i64, scratch_operands = 0 : i64, tpu.core_type = #tpu.core_type<tc>, window_params = [{transform_indices = @transform_0, window_bounds = array<i64: 1, 24, 256>}, {pipeline_mode = #tpu.pipeline_mode<synchronous>, transform_indices = @transform_1, window_bounds = array<i64: 512, 128>}, {pipeline_mode = #tpu.pipeline_mode<synchronous>, transform_indices = @transform_2, window_bounds = array<i64: 1, 128>}, {transform_indices = @transform_3, window_bounds = array<i64: 1, 16, 128>}]} {
    %c16_i32 = arith.constant 16 : i32
    %0 = arith.muli %arg1, %c16_i32 : i32
    %1 = tpu.assume_multiple %0, 16 : i32
    %c0 = arith.constant 0 : index
    %2 = arith.index_cast %1 : i32 to index
    %c0_0 = arith.constant 0 : index
    %3 = vector.load %arg2[%c0, %2, %c0_0] : memref<1x24x256xf32, #tpu.memory_space<vmem>>, vector<1x24x256xf32>
    %4 = vector.shape_cast %3 : vector<1x24x256xf32> to vector<24x256xf32>
    %5 = vector.extract_strided_slice %4 {offsets = [0, 0], sizes = [16, 256], strides = [1, 1]} : vector<24x256xf32> to vector<16x256xf32>
    %6 = arith.truncf %5 : vector<16x256xf32> to vector<16x256xbf16>
    %c0_1 = arith.constant 0 : index
    %c0_2 = arith.constant 0 : index
    %7 = vector.load %arg3[%c0_1, %c0_2] : memref<512x128xbf16, #tpu.memory_space<vmem>>, vector<256x128xbf16>
    %cst = arith.constant dense<0.000000e+00> : vector<16x128xf32>
    %8 = tpu.matmul %6, %7, %cst {dimension_numbers = #tpu.dot_dimension_numbers<[1], [0], [0], [1], [0, 0, 1, 1], [], []>} : vector<16x256xbf16>, vector<256x128xbf16>, vector<16x128xf32> -> vector<16x128xf32>
    %9 = vector.extract_strided_slice %4 {offsets = [1, 0], sizes = [16, 256], strides = [1, 1]} : vector<24x256xf32> to vector<16x256xf32>
    %10 = arith.truncf %9 : vector<16x256xf32> to vector<16x256xbf16>
    %c256 = arith.constant 256 : index
    %c0_3 = arith.constant 0 : index
    %11 = vector.load %arg3[%c256, %c0_3] : memref<512x128xbf16, #tpu.memory_space<vmem>>, vector<256x128xbf16>
    %cst_4 = arith.constant dense<0.000000e+00> : vector<16x128xf32>
    %12 = tpu.matmul %10, %11, %cst_4 {dimension_numbers = #tpu.dot_dimension_numbers<[1], [0], [0], [1], [0, 0, 1, 1], [], []>} : vector<16x256xbf16>, vector<256x128xbf16>, vector<16x128xf32> -> vector<16x128xf32>
    %13 = arith.addf %8, %12 : vector<16x128xf32>
    %c0_5 = arith.constant 0 : index
    %c0_6 = arith.constant 0 : index
    %14 = vector.load %arg4[%c0_5, %c0_6] : memref<1x128xf32, #tpu.memory_space<vmem>>, vector<1x128xf32>
    %15 = vector.broadcast %14 : vector<1x128xf32> to vector<16x128xf32>
    %16 = arith.addf %13, %15 : vector<16x128xf32>
    %cst_7 = arith.constant dense<0xFF800000> : vector<16xf32>
    %17 = vector.multi_reduction <maximumf>, %16, %cst_7 [1] : vector<16x128xf32> to vector<16xf32>
    %18 = vector.shape_cast %17 : vector<16xf32> to vector<16x1xf32>
    %19 = vector.broadcast %18 : vector<16x1xf32> to vector<16x128xf32>
    %20 = arith.subf %16, %19 : vector<16x128xf32>
    %21 = math.exp %20 : vector<16x128xf32>
    %cst_8 = arith.constant dense<0.000000e+00> : vector<16xf32>
    %22 = vector.multi_reduction <add>, %21, %cst_8 [1] : vector<16x128xf32> to vector<16xf32>
    %23 = vector.shape_cast %22 : vector<16xf32> to vector<16x1xf32>
    %24 = math.log %23 : vector<16x1xf32>
    %25 = arith.addf %24, %18 : vector<16x1xf32>
    %26 = vector.broadcast %25 : vector<16x1xf32> to vector<16x128xf32>
    %27 = arith.subf %16, %26 : vector<16x128xf32>
    %c0_9 = arith.constant 0 : index
    %c0_10 = arith.constant 0 : index
    %c0_11 = arith.constant 0 : index
    %28 = vector.load %arg5[%c0_9, %c0_10, %c0_11] : memref<1x16x128xf32, #tpu.memory_space<vmem>>, vector<1x16x128xf32>
    %29 = vector.shape_cast %28 : vector<1x16x128xf32> to vector<16x128xf32>
    %30 = vector.shape_cast %27 : vector<16x128xf32> to vector<1x16x128xf32>
    tpu.vector_store %arg5[%c0_9, %c0_10, %c0_11], %30 {strides = array<i32>} : memref<1x16x128xf32, #tpu.memory_space<vmem>>, vector<1x16x128xf32>,
    return
  }
  func.func @transform_0(%arg0: i32, %arg1: i32) -> (i32, i32, i32) {
    %c0_i32 = arith.constant 0 : i32
    %c0_i32_0 = arith.constant 0 : i32
    %c0_i32_1 = arith.constant 0 : i32
    return %arg0, %c0_i32, %c0_i32_0 : i32, i32, i32
  }
  func.func @transform_1(%arg0: i32, %arg1: i32) -> (i32, i32) {
    %c0_i32 = arith.constant 0 : i32
    %c0_i32_0 = arith.constant 0 : i32
    %c0_i32_1 = arith.constant 0 : i32
    return %c0_i32, %c0_i32_0 : i32, i32
  }
  func.func @transform_2(%arg0: i32, %arg1: i32) -> (i32, i32) {
    %c0_i32 = arith.constant 0 : i32
    %c0_i32_0 = arith.constant 0 : i32
    %c0_i32_1 = arith.constant 0 : i32
    return %c0_i32, %c0_i32_0 : i32, i32
  }
  func.func @transform_3(%arg0: i32, %arg1: i32) -> (i32, i32, i32) {
    %c0_i32 = arith.constant 0 : i32
    %c0_i32_0 = arith.constant 0 : i32
    return %arg0, %arg1, %c0_i32 : i32, i32, i32
  }
}

</mosaic_0001>

<bundles_post_ra>
// kernel: ctc_phone_criterion_forward.1
= control target key start
LH: loop header
LB: loop body
LE: loop exit
PB: predicated region body
PF: predicated region fallthrough
CT: control target
= control target key end

     0   :  { %s911_s12 = smov 0   ;;  %s913_s13 = smov 0   ;;  %s1047_s0 = inlined_call_operand.vmem [shape: f32[2,24,256], index: 0, kind: input, shape index: {}]   ;;  %s1048_s1 = inlined_call_operand.vmem [shape: bf16[512,128], index: 1, kind: input, shape index: {}]   ;;  %s1049_s2 = inlined_call_operand.vmem [shape: f32[1,128], index: 2, kind: input, shape index: {}]   ;;  %s1050_s3 = inlined_call_operand.vmem [shape: f32[2,16,128], index: 3, kind: output, shape index: {}]  }
   0x1   :  { %s915_s14 = smov 0  }
   0x2 LB: > { %s25_s15 = sadd.s32 1, %s885_s13  ;;  %p666_p0 = scmp.ge.s32.totalorder %s889_s14, 1  ;;  %s889_s14 = sphi %s915_s14, %s13_s14   ;;  %s885_s13 = sphi %s913_s13, %s1052_s13   ;;  %s881_s12 = sphi %s911_s12, %s1051_s12  }
   0x3   : > { %p27_p1 = scmp.ge.s32.totalorder %s25_s15, 2  ;;  %p151_p2 = scmp.lt.s32.totalorder %s889_s14, 3 }
   0x5   : > { %s1054_s15 = smov (%p27_p1, %s25_s15), 0  ;;  %p152_p3 = pnand %p666_p0, %p151_p2 }
   0x6   : > { %p179_p4 = scmp.lt.s32.totalorder (!%p152_p3), %s881_s12, 1 }
   0x7   : > { %155 = sbr.rel (%p152_p3) target bundleno = 449 (0x1c1), region = 32 }
   0xc   : > { %v824_v0 = vld [vmem:[%s1048_s1 + $0xb8] sm:$0xff]  ;;  %v823_v4 = vld [vmem:[%s1048_s1 + $0xb0] sm:$0xff]  ;;  %s1056_s12 = smov (!%p179_p4, %s881_s12), 1  ;;  %v822_v8 = vld [vmem:[%s1048_s1 + $0xa8] sm:$0xff]  ;;  %vm274_vm0 = vsmask.f32 7424 }
   0xd   : > { %v832_v1 = vld [vmem:[%s1048_s1 + $0xf8] sm:$0xff]  ;;  %397 = vmatpush.bf16.msra.mxu0 %v824_v0  ;;  %v831_v5 = vld [vmem:[%s1048_s1 + $0xf0] sm:$0xff]  ;;  %s833_s5 = smul.u32 48, %s1056_s12  ;;  %v830_v9 = vld [vmem:[%s1048_s1 + $0xe8] sm:$0xff]  ;;  %s800_s17 = sshll.u32 %s1056_s12, 4 }
   0xe   : > { %v808_v2 = vld [vmem:[%s1048_s1 + $0x38] sm:$0xff]  ;;  %411 = vmatpush.bf16.msra.mxu1 %v832_v1  ;;  %v807_v6 = vld [vmem:[%s1048_s1 + $0x30] sm:$0xff]  ;;  %v806_v10 = vld [vmem:[%s1048_s1 + $0x28] sm:$0xff] }
   0xf   : > { %v816_v3 = vld [vmem:[%s1048_s1 + $0x78] sm:$0xff]  ;;  %521 = vmatpush.bf16.msra.mxu2 %v808_v2  ;;  %v815_v7 = vld [vmem:[%s1048_s1 + $0x70] sm:$0xff]  ;;  %v814_v11 = vld [vmem:[%s1048_s1 + $0x68] sm:$0xff]  ;;  %s183_s20 = scalar_lea.vmem %s1047_s0, %s833_s5 }
  0x10   : > { %535 = vmatpush.bf16.msra.mxu3 %v816_v3  ;;  %v821_v12 = vld [vmem:[%s1048_s1 + $0xa0] sm:$0xff]  ;;  %v202_v17 = vld [vmem:[%s183_s20 + $0x10] sm:$0xff]  ;;  %v201_v18 = vld [vmem:[%s183_s20 + $0x8] sm:$0xff] }
  0x11   : > { %398 = vmatpush.bf16.msra.mxu0 %v823_v4  ;;  %v829_v13 = vld [vmem:[%s1048_s1 + $0xe0] sm:$0xff]  ;;  %v203_v19 = vld [vmem:[%s183_s20 + $0x18] sm:$0xff]  ;;  %v205_v27 = vld [vmem:[%s183_s20 + $0x28] sm:$0xff] }
  0x12   : > { %412 = vmatpush.bf16.msra.mxu1 %v831_v5  ;;  %v805_v14 = vld [vmem:[%s1048_s1 + $0x20] sm:$0xff]  ;;  %v820_v20 = vld [vmem:[%s1048_s1 + $0x98] sm:$0xff]  ;;  %v207_v24 = vpack.c.bf16 %v203_v19, %v201_v18  ;;  %v819_v29 = vld [vmem:[%s1048_s1 + $0x90] sm:$0xff]  ;;  %v241_v32 = vpack.c.bf16 %v205_v27, %v205_v27 }
  0x13   : > { %522 = vmatpush.bf16.msra.mxu2 %v807_v6  ;;  %v813_v15 = vld [vmem:[%s1048_s1 + $0x60] sm:$0xff]  ;;  %v828_v21 = vld [vmem:[%s1048_s1 + $0xd8] sm:$0xff]  ;;  %v827_v30 = vld [vmem:[%s1048_s1 + $0xd0] sm:$0xff] }
  0x14   : > { %536 = vmatpush.bf16.msra.mxu3 %v815_v7  ;;  %v200_v16 = vld [vmem:[%s183_s20] sm:$0xff]  ;;  %v804_v25 = vld [vmem:[%s1048_s1 + $0x18] sm:$0xff]  ;;  %v290_v33 = vshll.u32 %v207_v24, 16  ;;  %v803_v34 = vld [vmem:[%s1048_s1 + $0x10] sm:$0xff]  ;;  %v288_v41 = vshrl.u32 %v207_v24, 16  ;;  %v295_v43 = vshll.u32 %v241_v32, 16 }
  0x15   : > { %399 = vmatpush.bf16.msra.mxu0 %v822_v8  ;;  %v204_v22 = vld [vmem:[%s183_s20 + $0x20] sm:$0xff]  ;;  %v206_v23 = vpack.c.bf16 %v202_v17, %v200_v16  ;;  %v812_v26 = vld [vmem:[%s1048_s1 + $0x58] sm:$0xff]  ;;  %v811_v35 = vld [vmem:[%s1048_s1 + $0x50] sm:$0xff]  ;;  %s192_s20 = scalar_lea.vmem %s1050_s3, %s800_s17 }
  0x16   : > { %413 = vmatpush.bf16.msra.mxu1 %v830_v9  ;;  %v240_v28 = vpack.c.bf16 %v204_v22, %v204_v22  ;;  %v818_v38 = vld [vmem:[%s1048_s1 + $0x88] sm:$0xff]  ;;  %v292_v42 = vrot.slane %v290_v33, 1  ;;  %v817_v46 = vld [vmem:[%s1048_s1 + $0x80] sm:$0xff]  ;;  %v297_v51 = vrot.slane %v295_v43, 1 }
  0x17   : > { %523 = vmatpush.bf16.msra.mxu2 %v806_v10  ;;  %v278_v31 = vshll.u32 %v206_v23, 16  ;;  %v276_v36 = vshrl.u32 %v206_v23, 16  ;;  %v826_v39 = vld [vmem:[%s1048_s1 + $0xc8] sm:$0xff]  ;;  %v825_v47 = vld [vmem:[%s1048_s1 + $0xc0] sm:$0xff] }
  0x18   : > { %537 = vmatpush.bf16.msra.mxu3 %v814_v11  ;;  %v283_v37 = vshll.u32 %v240_v28, 16  ;;  %v802_v44 = vld [vmem:[%s1048_s1 + $0x8] sm:$0xff]  ;;  %v293_v50 = vor.u32 %v292_v42, %v288_v41  ;;  %v801_v52 = vld [vmem:[%s1048_s1] sm:$0xff] }
  0x19   : > { %400 = vmatpush.bf16.msra.mxu0 %v821_v12  ;;  %v280_v40 = vrot.slane %v278_v31, 1  ;;  %v810_v45 = vld [vmem:[%s1048_s1 + $0x48] sm:$0xff]  ;;  %v809_v53 = vld [vmem:[%s1048_s1 + $0x40] sm:$0xff] }
  0x1a   : > { %414 = vmatpush.bf16.msra.mxu1 %v829_v13  ;;  %v285_v49 = vrot.slane %v283_v37, 1  ;;  %v298_v55 = vsel %vm274_vm0, %v293_v50, %v297_v51  ;;  %v858_v62 = vld [vmem:[%s1049_s2] ss:$0 sm:$0xff] }
  0x1b   : > { %524 = vmatpush.bf16.msra.mxu2 %v805_v14  ;;  %v281_v48 = vor.u32 %v280_v40, %v276_v36 }
  0x1c   : > { %538 = vmatpush.bf16.msra.mxu3 %v813_v15 }
  0x1d   : > { %401 = vmatpush.bf16.msra.mxu0 %v820_v20  ;;  %v286_v54 = vsel %vm274_vm0, %v281_v48, %v285_v49 }
  0x1e   : > { %415 = vmatpush.bf16.msra.mxu1 %v828_v21 }
  0x1f   : > { %525 = vmatpush.bf16.msra.mxu2 %v804_v25 }
  0x20   : > { %539 = vmatpush.bf16.msra.mxu3 %v812_v26 }
  0x21   : > { %402 = vmatpush.bf16.msra.mxu0 %v819_v29 }
  0x22   : > { %416 = vmatpush.bf16.msra.mxu1 %v827_v30 }
  0x23   : > { %526 = vmatpush.bf16.msra.mxu2 %v803_v34 }
  0x24   : > { %540 = vmatpush.bf16.msra.mxu3 %v811_v35 }
  0x25   : > { %403 = vmatpush.bf16.msra.mxu0 %v818_v38 }
  0x26   : > { %417 = vmatpush.bf16.msra.mxu1 %v826_v39 }
  0x27   : > { %527 = vmatpush.bf16.msra.mxu2 %v802_v44 }
  0x28   : > { %541 = vmatpush.bf16.msra.mxu3 %v810_v45 }
  0x29   : > { %404 = vmatpush.bf16.msra.mxu0 %v817_v46 }
  0x2a   : > { %418 = vmatpush.bf16.msra.mxu1 %v825_v47 }
  0x2b   : > { %528 = vmatpush.bf16.msra.mxu2 %v801_v52 }
  0x2c   : > { %542 = vmatpush.bf16.msra.mxu3 %v809_v53  ;;  %405 = vmatmul.bf16.vlgmr.msra.gmra.mxu0 %v286_v54 }
  0x2d   : > { %419 = vmatmul.bf16.vlgmr.msra.gmra.mxu1 %v298_v55 }
  0x2e   : > { %529 = vmatmul.bf16.vlgmr.msra.gmra.mxu2 %v206_v23 }
  0x2f   : > { %543 = vmatmul.bf16.vlgmr.msra.gmra.mxu3 %v207_v24 }
  0xa9   : > { %v406_v56 = vpop.f32.mrf.mxu0 }
  0xaa   : > { %v420_v57 = vpop.f32.mrf.mxu1 }
  0xab   : > { %v421_v58 = vadd.f32 %v420_v57, %v406_v56 }
  0xb1   : > { %v530_v59 = vpop.f32.mrf.mxu2  ;;  %v408_v0 = vpop.f32.mrf.mxu0 }
  0xb2   : > { %v544_v60 = vpop.f32.mrf.mxu3  ;;  %v531_v61 = vadd.f32 %v530_v59, %v421_v58  ;;  %v422_v1 = vpop.f32.mrf.mxu1 }
  0xb3   : > { %v423_v3 = vadd.f32 %v422_v1, %v408_v0 }
  0xb4   : > { %v545_v63 = vadd.f32 %v544_v60, %v531_v61 }
  0xb6   : > { %v553_v2 = vadd.f32 %v858_v62, %v545_v63 }
  0xb8   : > { %555 = vmax.xlane.f32.xlu0 %v553_v2 }
  0xb9   : > { %v532_v4 = vpop.f32.mrf.mxu2 }
  0xba   : > { %v533_v5 = vadd.f32 %v532_v4, %v423_v3  ;;  %v546_v6 = vpop.f32.mrf.mxu3 }
  0xbc   : > { %v547_v7 = vadd.f32 %v546_v6, %v533_v5 }
  0xbe   : > { %v554_v8 = vadd.f32 %v858_v62, %v547_v7 }
  0xc0   : > { %557 = vmax.xlane.f32.xlu0 %v554_v8 }
 0x12b   : > { %v556_v9 = vpop.xlane.xlu0 %555 }
 0x12c   : > { %v559_v10 = vsub.f32 %v553_v2, %v556_v9 }
 0x12e   : > { %v561_v11 = vmul.f32 1.442695, %v559_v10 }
 0x130   : > { %859 = vpow2.f32 %v561_v11 }
 0x133   : > { %v558_v12 = vpop.xlane.xlu0 %557 }
 0x134   : > { %v560_v13 = vsub.f32 %v554_v8, %v558_v12 }
 0x136   : > { %v860_v14 = vpop.eup %859  ;;  %v563_v15 = vmul.f32 1.442695, %v560_v13 }
 0x137   : > { %565 = vadd.xlane.f32.xlu1 %v860_v14 }
 0x138   : > { %861 = vpow2.f32 %v563_v15 }
 0x13e   : > { %v862_v16 = vpop.eup %861 }
 0x13f   : > { %567 = vadd.xlane.f32.xlu1 %v862_v16 }
 0x1aa   : > { %v566_v17 = vpop.xlane.xlu1 %565 }
 0x1ab   : > { %863 = vlog2.f32 %v566_v17 }
 0x1b1   : > { %v864_v18 = vpop.eup %863 }
 0x1b2   : > { %v570_v19 = vmul.f32 0.6931472, %v864_v18  ;;  %v568_v20 = vpop.xlane.xlu1 %567 }
 0x1b3   : > { %865 = vlog2.f32 %v568_v20 }
 0x1b4   : > { %v573_v21 = vadd.f32 %v570_v19, %v556_v9 }
 0x1b6   : > { %v575_v22 = vsub.f32 %v553_v2, %v573_v21 }
 0x1b8   : > { %577 = vst [vmem:[%s192_s20] sm:$0xff] %v575_v22 }
 0x1b9   : > { %v866_v23 = vpop.eup %865 }
 0x1ba   : > { %v572_v24 = vmul.f32 0.6931472, %v866_v23 }
 0x1bc   : > { %v574_v25 = vadd.f32 %v572_v24, %v558_v12 }
 0x1be   : > { %v576_v26 = vsub.f32 %v554_v8, %v574_v25 }
 0x1c0   : > { %578 = vst [vmem:[%s192_s20 + $0x8] sm:$0xff] %v576_v26 }
 0x1c1 PF: > { %s13_s14 = sadd.s32 1, %s889_s14   ;;  %s1051_s12 = smov %s885_s13 }
 0x1c2   : > { %p10_p5 = scmp.ge.s32.totalorder %s13_s14, 4   ;;  %s1052_s13 = smov %s1054_s15 }
 0x1c4   :  { %12 = sbr.rel (!%p10_p5) target bundleno = 2 (0x2), region = 63 }

</bundles_post_ra>
